<compile_context>
chip_gen: v7x
topology: tpu7x:2x2x1
jax: 0.10.0
libtpu: 0.0.40
codegen_flags: <defaults>
</compile_context>

<pallas_src>
import math
import functools

import jax
import jax.numpy as jnp
from jax.experimental import pallas as pl
from jax.experimental.pallas import tpu as pltpu


def make_sinusoidal_pe(max_len: int, d_model: int) -> jnp.ndarray:
    """Deterministic buffer identical to the PyTorch __init__ (shape (max_len, 1, d_model))."""
    position = jnp.arange(0, max_len, dtype=jnp.float32)[:, None]            # (max_len, 1)
    div_term = jnp.exp(
        jnp.arange(0, d_model, 2, dtype=jnp.float32) * (-math.log(10000.0) / d_model)
    )                                                                         # (ceil(d_model/2),)
    angles = position * div_term                                              # (max_len, ceil(D/2))
    pe = jnp.zeros((max_len, d_model), dtype=jnp.float32)
    pe = pe.at[:, 0::2].set(jnp.sin(angles))
    pe = pe.at[:, 1::2].set(jnp.cos(angles[:, : d_model // 2]))               # odd d_model safe
    return pe[:, None, :]                                                     # (max_len, 1, d_model)


# -----------------------------------------------------------------------------
# trace-time layout / hardware helpers (plain Python ints only)
# -----------------------------------------------------------------------------

def _cdiv(a: int, b: int) -> int:
    return -(-a // b)


def _round_up(a: int, b: int) -> int:
    return _cdiv(a, b) * b


def _sublane_mult(itemsize: int) -> int:
    # rows per packed sublane group: f32 -> 8, bf16 -> 16, int8/fp8 -> 32
    return {4: 8, 2: 16, 1: 32}.get(itemsize, 8)


def _hw_config() -> dict:
    """Per-generation tile / VMEM targets derived from the chip's VMEM capacity."""
    cap = None
    try:
        info = pltpu.get_tpu_info()
        cap = int(getattr(info, "vmem_capacity_bytes", 0)) or None
    except Exception:
        cap = None
    if cap is not None and cap > (64 << 20):
        # v5e / v6e: 128 MiB VMEM, single TensorCore -> big blocks, no grid-split pressure.
        return {"vmem_cap": 96 << 20, "target_block_bytes": 8 << 20, "two_cores": False}
    # v7x (64 MiB / TC, 2 TCs) or unknown chip -> conservative cap, keep both cores fed.
    return {"vmem_cap": 48 << 20, "target_block_bytes": 6 << 20, "two_cores": True}


def _per_row_padded_bytes(BD: int, D: int, x_it: int, o_it: int, p_it: int) -> int:
    """Layout-padded VMEM bytes per seq row that scale with the tile height:
    double-buffered x in + out blocks, double-buffered pe block, plus fp32 temps for the
    in-kernel lane-tile / promoted add."""
    lanes_x = _round_up(BD, 128)
    lanes_pe = _round_up(D, 128)
    return (2 * lanes_x * x_it            # x input, double-buffered
            + 2 * lanes_x * o_it          # output, double-buffered
            + 2 * lanes_pe * p_it         # pe input, double-buffered
            + 2 * lanes_x * 4)            # tiled-pe / promoted-add fp32 temps headroom


def _pick_seq_tile(S: int, BD: int, D: int, x_it: int, o_it: int, p_it: int, cfg: dict) -> int:
    sub = max(_sublane_mult(x_it), _sublane_mult(o_it))        # dtype-aware rounding (8/16/32)
    lanes_x = _round_up(BD, 128)
    per_row = _per_row_padded_bytes(BD, D, x_it, o_it, p_it)

    ts_budget = max(sub, (cfg["vmem_cap"] // per_row) // sub * sub)
    ts_target = max(sub, (cfg["target_block_bytes"] // (lanes_x * max(x_it, o_it))) // sub * sub)
    ts = min(ts_budget, ts_target)

    if ts >= S:
        ts = S                                                  # full extent: always layout-legal
        if cfg["two_cores"] and S >= 2 * sub:
            # give the second TensorCore work without shrinking below a sublane-aligned tile
            ts = max(sub, _round_up(_cdiv(S, 2), sub))
    elif cfg["two_cores"]:
        n = _cdiv(S, ts)
        if n % 2 == 1:
            # balance the two TensorCores with an even step count
            ts = max(sub, _round_up(_cdiv(S, n + 1), sub))
    return min(ts, S)


def _vmem_limit_bytes(ts: int, BD: int, D: int, x_it: int, o_it: int, p_it: int, cfg: dict) -> int:
    sub = max(_sublane_mult(x_it), _sublane_mult(o_it))
    need = _round_up(ts, sub) * _per_row_padded_bytes(BD, D, x_it, o_it, p_it)
    # generous headroom, but never above the per-generation cap (48 MiB on v7x's 64 MiB/TC VMEM)
    return int(min(max(2 * need, 32 << 20), cfg["vmem_cap"]))


# -----------------------------------------------------------------------------
# kernel
# -----------------------------------------------------------------------------

def _pe_add_kernel(x_ref, pe_ref, o_ref, *, batch: int):
    # x_ref: (ts, B*D); pe_ref: (ts, D) fp32.  Flattened column c = b*D + d needs pe[:, c % D],
    # i.e. B copies of the pe tile concatenated along the lane axis (cheap XLU/VPU work,
    # free in an HBM-bound kernel).
    pe = pe_ref[...]
    if batch > 1:
        pe = jnp.concatenate([pe] * batch, axis=-1)            # (ts, B*D)
    o_ref[...] = x_ref[...].astype(o_ref.dtype) + pe.astype(o_ref.dtype)


@functools.partial(jax.jit, static_argnames=("ts", "vmem_limit"))
def _position_embedding_impl(x, pe, *, ts: int, vmem_limit: int):
    S, B, D = x.shape
    BD = B * D
    out_dtype = jnp.result_type(x.dtype, pe.dtype)             # fp32 buffer promotes, like torch

    # trace-time glue: contiguous flatten (lane-dense output) + buffer slice (keeps fp32)
    x2d = x.reshape(S, BD)
    pe2d = pe[:S, 0, :]

    x_it = jnp.dtype(x.dtype).itemsize
    o_it = jnp.dtype(out_dtype).itemsize
    p_it = jnp.dtype(pe2d.dtype).itemsize
    cost = pl.CostEstimate(
        flops=S * BD,
        transcendentals=0,
        bytes_accessed=S * BD * (x_it + o_it) + S * D * p_it,
    )

    out2d = pl.pallas_call(
        functools.partial(_pe_add_kernel, batch=B),
        out_shape=jax.ShapeDtypeStruct((S, BD), out_dtype),
        grid_spec=pltpu.PrefetchScalarGridSpec(
            num_scalar_prefetch=0,
            grid=(pl.cdiv(S, ts),),
            in_specs=[
                # (ts, BD): ts is a multiple of 8/16 or == S; BD equals the full lane dim
                pl.BlockSpec((ts, BD), lambda i: (i, 0)),
                # pe: (ts, D) with D equal to the full dim
                pl.BlockSpec((ts, D), lambda i: (i, 0)),
            ],
            out_specs=pl.BlockSpec((ts, BD), lambda i: (i, 0)),
        ),
        compiler_params=pltpu.CompilerParams(
            dimension_semantics=("parallel",),
            vmem_limit_bytes=vmem_limit,
        ),
        cost_estimate=cost,
    )(x2d, pe2d)
    return out2d.reshape(S, B, D)


def position_embedding_forward(x: jnp.ndarray, pe: jnp.ndarray) -> jnp.ndarray:
    """x: (S, B, D); pe: (max_len, 1, D) fp32 buffer. Returns x + pe[:S] (eval-mode dropout)."""
    S, B, D = x.shape
    if pe.shape[0] < S or pe.shape[-1] != D:
        raise ValueError("pe buffer is too small / mismatched for this input")
    out_dtype = jnp.result_type(x.dtype, pe.dtype)
    cfg = _hw_config()
    x_it = jnp.dtype(x.dtype).itemsize
    o_it = jnp.dtype(out_dtype).itemsize
    p_it = jnp.dtype(pe.dtype).itemsize
    ts = _pick_seq_tile(S, B * D, D, x_it, o_it, p_it, cfg)
    vmem_limit = _vmem_limit_bytes(ts, B * D, D, x_it, o_it, p_it, cfg)
    return _position_embedding_impl(x, pe, ts=ts, vmem_limit=vmem_limit)


if __name__ == "__main__":
    d_model = 32
    max_len = 64     # small synthetic max_len (module default is 5000)
    seq = 8
    batch = 2

    key = jax.random.PRNGKey(0)
    x = jax.random.normal(key, (seq, batch, d_model), dtype=jnp.float32)
    pe = make_sinusoidal_pe(max_len, d_model)

    out = position_embedding_forward(x, pe)
    out = jax.block_until_ready(out)

    # reference check (eval-mode dropout == identity)
    ref = x + pe[:seq]
    assert out.shape == (seq, batch, d_model)
    assert out.dtype == ref.dtype
    assert jnp.allclose(out, ref, atol=1e-6, rtol=1e-6), "mismatch vs reference"

    print("KERNEL_OK")
</pallas_src>

<mosaic_0001>
module attributes {stable_mosaic.version = 11 : i64} {
  func.func @_pe_add_kernel(%arg0: i32, %arg1: memref<8x64xf32, #tpu.memory_space<vmem>>, %arg2: memref<8x32xf32, #tpu.memory_space<vmem>>, %arg3: memref<8x64xf32, #tpu.memory_space<vmem>>) attributes {dimension_semantics = [#tpu.dimension_semantics<parallel>], iteration_bounds = array<i64: 1>, scalar_prefetch = 0 : i64, scratch_operands = 0 : i64, tpu.core_type = #tpu.core_type<tc>, window_params = [{transform_indices = @transform_0, window_bounds = array<i64: 8, 64>}, {transform_indices = @transform_1, window_bounds = array<i64: 8, 32>}, {transform_indices = @transform_2, window_bounds = array<i64: 8, 64>}]} {
    %c0 = arith.constant 0 : index
    %c0_0 = arith.constant 0 : index
    %0 = vector.load %arg2[%c0, %c0_0] : memref<8x32xf32, #tpu.memory_space<vmem>>, vector<8x32xf32>
    %1 = tpu.concatenate %0, %0 in 1 : vector<8x32xf32>, vector<8x32xf32> -> vector<8x64xf32>
    %c0_1 = arith.constant 0 : index
    %c0_2 = arith.constant 0 : index
    %2 = vector.load %arg1[%c0_1, %c0_2] : memref<8x64xf32, #tpu.memory_space<vmem>>, vector<8x64xf32>
    %3 = arith.addf %2, %1 : vector<8x64xf32>
    %c0_3 = arith.constant 0 : index
    %c0_4 = arith.constant 0 : index
    %4 = vector.load %arg3[%c0_3, %c0_4] : memref<8x64xf32, #tpu.memory_space<vmem>>, vector<8x64xf32>
    tpu.vector_store %arg3[%c0_3, %c0_4], %3 {strides = array<i32>} : memref<8x64xf32, #tpu.memory_space<vmem>>, vector<8x64xf32>,
    return
  }
  func.func @transform_0(%arg0: i32) -> (i32, i32) {
    %c0_i32 = arith.constant 0 : i32
    %c0_i32_0 = arith.constant 0 : i32
    return %arg0, %c0_i32 : i32, i32
  }
  func.func @transform_1(%arg0: i32) -> (i32, i32) {
    %c0_i32 = arith.constant 0 : i32
    %c0_i32_0 = arith.constant 0 : i32
    return %arg0, %c0_i32 : i32, i32
  }
  func.func @transform_2(%arg0: i32) -> (i32, i32) {
    %c0_i32 = arith.constant 0 : i32
    %c0_i32_0 = arith.constant 0 : i32
    return %arg0, %c0_i32 : i32, i32
  }
}

</mosaic_0001>

<bundles_post_ra>
// kernel: _position_embedding_impl.1
= control target key start
LH: loop header
LB: loop body
LE: loop exit
PB: predicated region body
PF: predicated region fallthrough
CT: control target
= control target key end

     0   :  { %s27_s11 = smov 32   ;;  %vm16_vm0 = vcmask 261120   ;;  %vm20_vm1 = vcmask 523264   ;;  %s52_s1 = inlined_call_operand.vmem [shape: f32[8,32], index: 1, kind: input, shape index: {}]   ;;  %s53_s0 = inlined_call_operand.vmem [shape: f32[8,64], index: 0, kind: input, shape index: {}]   ;;  %s54_s2 = inlined_call_operand.vmem [shape: f32[8,64], index: 2, kind: output, shape index: {}]  }
   0x1   :  { %v11_v0 = vld [vmem:[%s52_s1] sm:$0xff] }
   0x2   :  { %13 = vrot.lane.b32.xlu0 %v11_v0, %s27_s11  ;;  %v18_v1 = vld [vmem:[%s53_s0] sm:$0xff] }
  0x74   :  { %v14_v2 = vpop.permute.xlu0 %13 }
  0x75   :  { %v17_v3 = vsel %vm16_vm0, %v11_v0, %v14_v2 }
  0x76   :  { %v19_v4 = vadd.f32 %v18_v1, %v17_v3 }
  0x78   :  { %21 = vst.msk [vmem:[%s54_s2] sm:$0xff] %vm20_vm1, %v19_v4 }

</bundles_post_ra>
